<compile_context>
chip_gen: v7x
topology: tpu7x:2x2x1
jax: 0.10.0
libtpu: 0.0.40
codegen_flags: <defaults>
</compile_context>

<pallas_src>
import functools

import jax
import jax.numpy as jnp
from jax import lax
from jax.experimental import pallas as pl
from jax.experimental.pallas import tpu as pltpu


def _shift_rows(a, H, direction):
    """Vertical shift with zero fill on a value.

    direction=+1: out[y] = a[y-1] (row 0 zeroed)  -- the ky=0 conv tap.
    direction=-1: out[y] = a[y+1] (row H-1 zeroed) -- the ky=2 conv tap.
    Uses the XLU (roll) + VPU (where) slots; no stores, no scratch.
    """
    shift = direction % H                       # +1 -> 1, -1 -> H-1 (no negative shifts)
    rolled = pltpu.roll(a, shift=shift, axis=0)
    row = lax.broadcasted_iota(jnp.int32, a.shape, 0)
    edge = 0 if direction == 1 else H - 1
    return jnp.where(row == edge, 0, rolled)


def _double_conv_kernel(x_ref, t1_ref, b1_ref, t2_ref, b2_ref, o_ref, *, H):
    """Fused (3x3 conv + bias + ReLU) x 2 for one batch element, lane-dense.

    x_ref  : (1, H, W*Cin)            input, compute dtype
    t1_ref : (3, W*Cin,  W*Cmid)      block-Toeplitz weights (ky-indexed)
    b1_ref : (1, W*Cmid)              bias pre-tiled over W (f32)
    t2_ref : (3, W*Cmid, W*Cout)      block-Toeplitz weights (ky-indexed)
    b2_ref : (1, W*Cout)              bias pre-tiled over W (f32)
    o_ref  : (1, H, W*Cout)           lane-dense output
    """
    x = x_ref[0]                                  # (H, W*Cin)
    x_dn = _shift_rows(x, H, +1)                  # x_dn[y] = x[y-1]
    x_up = _shift_rows(x, H, -1)                  # x_up[y] = x[y+1]

    # ---- stage 1: 3 lane-dense matmuls (one per ky tap) + bias + ReLU ----
    acc1 = jnp.dot(x_dn, t1_ref[0], preferred_element_type=jnp.float32)
    acc1 = acc1 + jnp.dot(x,    t1_ref[1], preferred_element_type=jnp.float32)
    acc1 = acc1 + jnp.dot(x_up, t1_ref[2], preferred_element_type=jnp.float32)
    y1 = jnp.maximum(acc1 + b1_ref[...], 0.0)     # f32, (H, W*Cmid)

    # Mid activation never touches HBM; cast (possibly to bf16) only for the MXU.
    y1c = y1.astype(t2_ref.dtype)
    y1_dn = _shift_rows(y1c, H, +1)
    y1_up = _shift_rows(y1c, H, -1)

    # ---- stage 2 ----
    acc2 = jnp.dot(y1_dn, t2_ref[0], preferred_element_type=jnp.float32)
    acc2 = acc2 + jnp.dot(y1c,   t2_ref[1], preferred_element_type=jnp.float32)
    acc2 = acc2 + jnp.dot(y1_up, t2_ref[2], preferred_element_type=jnp.float32)
    y2 = jnp.maximum(acc2 + b2_ref[...], 0.0)     # f32, (H, W*Cout)

    o_ref[0] = y2.astype(o_ref.dtype)             # lane-dense store


def _band_weights(w_hwio, W):
    """HWIO (3,3,Ci,Co) -> (3, W*Ci, W*Co) block-Toeplitz band matrices.

    T[ky][(xo+kx-1)*Ci + ci, xo*Co + co] = w[ky, kx, ci, co]; out-of-range
    input columns are simply dropped, which implements the horizontal zero pad.
    """
    kh, kw, ci, co = w_hwio.shape
    mats = []
    for ky in range(kh):
        t = jnp.zeros((W * ci, W * co), w_hwio.dtype)
        for kx in range(kw):
            sel = jnp.eye(W, k=1 - kx, dtype=w_hwio.dtype)  # row = col + kx - 1
            t = t + jnp.kron(sel, w_hwio[ky, kx])
        mats.append(t)
    return jnp.stack(mats)


def double_conv(x_nchw, params, *, compute_dtype=jnp.bfloat16,
                out_dtype=jnp.float32):
    """Forward pass of DoubleConv (norm='none').  x_nchw: (N, Cin, H, W) float32.

    compute_dtype: dtype of MXU operands (bf16 default: native on v6e/v7x and
    halves activation/weight HBM bytes).  Accumulation, bias and ReLU are f32.
    """
    w1, b1, w2, b2 = params
    N, Cin, H, W = x_nchw.shape
    Cmid = w1.shape[-1]
    Cout = w2.shape[-1]

    # Lane-dense NHWC-flattened activation: (N, H, W*Cin).
    x_lane = jnp.transpose(x_nchw, (0, 2, 3, 1)).reshape(N, H, W * Cin)
    x_lane = x_lane.astype(compute_dtype)

    # Block-Toeplitz weights and W-tiled biases (ideally precomputed per layer).
    t1 = _band_weights(w1, W).astype(compute_dtype)        # (3, W*Cin,  W*Cmid)
    t2 = _band_weights(w2, W).astype(compute_dtype)        # (3, W*Cmid, W*Cout)
    b1_lane = jnp.tile(b1, W).reshape(1, W * Cmid).astype(jnp.float32)
    b2_lane = jnp.tile(b2, W).reshape(1, W * Cout).astype(jnp.float32)

    kernel = functools.partial(_double_conv_kernel, H=H)

    itemsize = jnp.dtype(compute_dtype).itemsize
    flops = 2 * N * H * W * 9 * (Cin * Cmid + Cmid * Cout)
    bytes_accessed = (x_lane.size * itemsize
                      + t1.size * itemsize + t2.size * itemsize
                      + (b1_lane.size + b2_lane.size) * 4
                      + N * H * W * Cout * jnp.dtype(out_dtype).itemsize)

    out_flat = pl.pallas_call(
        kernel,
        out_shape=jax.ShapeDtypeStruct((N, H, W * Cout), out_dtype),
        grid_spec=pltpu.PrefetchScalarGridSpec(
            num_scalar_prefetch=0,
            grid=(N,),
            in_specs=[
                pl.BlockSpec((1, H, W * Cin), lambda n: (n, 0, 0)),
                pl.BlockSpec((3, W * Cin, W * Cmid), lambda n: (0, 0, 0)),
                pl.BlockSpec((1, W * Cmid), lambda n: (0, 0)),
                pl.BlockSpec((3, W * Cmid, W * Cout), lambda n: (0, 0, 0)),
                pl.BlockSpec((1, W * Cout), lambda n: (0, 0)),
            ],
            out_specs=pl.BlockSpec((1, H, W * Cout), lambda n: (n, 0, 0)),
        ),
        compiler_params=pltpu.CompilerParams(
            dimension_semantics=("parallel",),
        ),
        cost_estimate=pl.CostEstimate(flops=flops, transcendentals=0,
                                      bytes_accessed=bytes_accessed),
    )(x_lane, t1, b1_lane, t2, b2_lane)

    out_nhwc = out_flat.reshape(N, H, W, Cout)             # cheap flatten-inverse
    return jnp.transpose(out_nhwc, (0, 3, 1, 2))           # NHWC -> NCHW


def init_params(key, in_channels, out_channels, mid_channels=None):
    if not mid_channels:
        mid_channels = out_channels
    k1, k2, k3, k4 = jax.random.split(key, 4)
    # PyTorch Conv2d weight shape is (Cout,Cin,3,3); we store HWIO = (3,3,Cin,Cout).
    scale1 = 1.0 / jnp.sqrt(in_channels * 9.0)
    scale2 = 1.0 / jnp.sqrt(mid_channels * 9.0)
    w1 = jax.random.uniform(k1, (3, 3, in_channels, mid_channels),
                            jnp.float32, -scale1, scale1)
    b1 = jax.random.uniform(k2, (mid_channels,), jnp.float32, -scale1, scale1)
    w2 = jax.random.uniform(k3, (3, 3, mid_channels, out_channels),
                            jnp.float32, -scale2, scale2)
    b2 = jax.random.uniform(k4, (out_channels,), jnp.float32, -scale2, scale2)
    return (w1, b1, w2, b2)


def _reference(x_nchw, params):
    """Pure-JAX reference (lax.conv) for correctness check."""
    w1, b1, w2, b2 = params
    x = jnp.transpose(x_nchw, (0, 2, 3, 1))
    dn = ("NHWC", "HWIO", "NHWC")
    y = lax.conv_general_dilated(x, w1, (1, 1), "SAME", dimension_numbers=dn)
    y = jnp.maximum(y + b1[None, None, None, :], 0.0)
    y = lax.conv_general_dilated(y, w2, (1, 1), "SAME", dimension_numbers=dn)
    y = jnp.maximum(y + b2[None, None, None, :], 0.0)
    return jnp.transpose(y, (0, 3, 1, 2))


if __name__ == "__main__":
    key = jax.random.PRNGKey(0)
    kx, kp = jax.random.split(key)

    N, Cin, Cout, H, W = 2, 4, 8, 16, 16
    x = jax.random.normal(kx, (N, Cin, H, W), dtype=jnp.float32)
    params = init_params(kp, Cin, Cout)

    ref = jax.block_until_ready(_reference(x, params))

    # Exact f32 compute path vs. lax.conv reference.
    out_f32 = jax.block_until_ready(
        double_conv(x, params, compute_dtype=jnp.float32))
    assert out_f32.shape == (N, Cout, H, W)
    assert jnp.max(jnp.abs(out_f32 - ref)) < 1e-4

    # Default bf16-operand path (f32 MXU accumulation; mid activation is
    # quantized to bf16 before conv2) — looser tolerance.
    out_bf16 = jax.block_until_ready(double_conv(x, params))
    assert out_bf16.shape == (N, Cout, H, W)
    assert jnp.max(jnp.abs(out_bf16 - ref)) < 5e-2

    print("KERNEL_OK")
</pallas_src>

<mosaic_0001>
module attributes {stable_mosaic.version = 11 : i64} {
  func.func @_double_conv_kernel(%arg0: i32, %arg1: memref<1x16x64xf32, #tpu.memory_space<vmem>>, %arg2: memref<3x64x128xf32, #tpu.memory_space<vmem>>, %arg3: memref<1x128xf32, #tpu.memory_space<vmem>>, %arg4: memref<3x128x128xf32, #tpu.memory_space<vmem>>, %arg5: memref<1x128xf32, #tpu.memory_space<vmem>>, %arg6: memref<1x16x128xf32, #tpu.memory_space<vmem>>) attributes {dimension_semantics = [#tpu.dimension_semantics<parallel>], iteration_bounds = array<i64: 2>, scalar_prefetch = 0 : i64, scratch_operands = 0 : i64, tpu.core_type = #tpu.core_type<tc>, window_params = [{transform_indices = @transform_0, window_bounds = array<i64: 1, 16, 64>}, {pipeline_mode = #tpu.pipeline_mode<synchronous>, transform_indices = @transform_1, window_bounds = array<i64: 3, 64, 128>}, {pipeline_mode = #tpu.pipeline_mode<synchronous>, transform_indices = @transform_2, window_bounds = array<i64: 1, 128>}, {pipeline_mode = #tpu.pipeline_mode<synchronous>, transform_indices = @transform_3, window_bounds = array<i64: 3, 128, 128>}, {pipeline_mode = #tpu.pipeline_mode<synchronous>, transform_indices = @transform_4, window_bounds = array<i64: 1, 128>}, {transform_indices = @transform_5, window_bounds = array<i64: 1, 16, 128>}]} {
    %c0 = arith.constant 0 : index
    %c0_0 = arith.constant 0 : index
    %c0_1 = arith.constant 0 : index
    %0 = vector.load %arg1[%c0, %c0_0, %c0_1] : memref<1x16x64xf32, #tpu.memory_space<vmem>>, vector<1x16x64xf32>
    %1 = vector.shape_cast %0 : vector<1x16x64xf32> to vector<16x64xf32>
    %c1_i32 = arith.constant 1 : i32
    %2 = tpu.dynamic_rotate %1 by %c1_i32 dim 0 : vector<16x64xf32>, i32 -> vector<16x64xf32>
    %3 = tpu.iota {dimensions = array<i32: 0>} : vector<16x64xi32>
    %c0_i32 = arith.constant 0 : i32
    %4 = vector.broadcast %c0_i32 : i32 to vector<16x64xi32>
    %5 = arith.cmpi eq, %3, %4 : vector<16x64xi32>
    %c0_i32_2 = arith.constant 0 : i32
    %6 = arith.sitofp %c0_i32_2 : i32 to f32
    %7 = vector.broadcast %6 : f32 to vector<16x64xf32>
    %8 = arith.select %5, %7, %2 : vector<16x64xi1>, vector<16x64xf32>
    %c15_i32 = arith.constant 15 : i32
    %9 = tpu.dynamic_rotate %1 by %c15_i32 dim 0 : vector<16x64xf32>, i32 -> vector<16x64xf32>
    %10 = tpu.iota {dimensions = array<i32: 0>} : vector<16x64xi32>
    %c15_i32_3 = arith.constant 15 : i32
    %11 = vector.broadcast %c15_i32_3 : i32 to vector<16x64xi32>
    %12 = arith.cmpi eq, %10, %11 : vector<16x64xi32>
    %c0_i32_4 = arith.constant 0 : i32
    %13 = arith.sitofp %c0_i32_4 : i32 to f32
    %14 = vector.broadcast %13 : f32 to vector<16x64xf32>
    %15 = arith.select %12, %14, %9 : vector<16x64xi1>, vector<16x64xf32>
    %c0_5 = arith.constant 0 : index
    %c0_6 = arith.constant 0 : index
    %c0_7 = arith.constant 0 : index
    %16 = vector.load %arg2[%c0_5, %c0_6, %c0_7] : memref<3x64x128xf32, #tpu.memory_space<vmem>>, vector<1x64x128xf32>
    %17 = vector.shape_cast %16 : vector<1x64x128xf32> to vector<64x128xf32>
    %cst = arith.constant dense<0.000000e+00> : vector<16x128xf32>
    %18 = tpu.matmul %8, %17, %cst {dimension_numbers = #tpu.dot_dimension_numbers<[1], [0], [0], [1], [0, 0, 1, 1], [], []>} : vector<16x64xf32>, vector<64x128xf32>, vector<16x128xf32> -> vector<16x128xf32>
    %c1 = arith.constant 1 : index
    %c0_8 = arith.constant 0 : index
    %c0_9 = arith.constant 0 : index
    %19 = vector.load %arg2[%c1, %c0_8, %c0_9] : memref<3x64x128xf32, #tpu.memory_space<vmem>>, vector<1x64x128xf32>
    %20 = vector.shape_cast %19 : vector<1x64x128xf32> to vector<64x128xf32>
    %cst_10 = arith.constant dense<0.000000e+00> : vector<16x128xf32>
    %21 = tpu.matmul %1, %20, %cst_10 {dimension_numbers = #tpu.dot_dimension_numbers<[1], [0], [0], [1], [0, 0, 1, 1], [], []>} : vector<16x64xf32>, vector<64x128xf32>, vector<16x128xf32> -> vector<16x128xf32>
    %22 = arith.addf %18, %21 : vector<16x128xf32>
    %c2 = arith.constant 2 : index
    %c0_11 = arith.constant 0 : index
    %c0_12 = arith.constant 0 : index
    %23 = vector.load %arg2[%c2, %c0_11, %c0_12] : memref<3x64x128xf32, #tpu.memory_space<vmem>>, vector<1x64x128xf32>
    %24 = vector.shape_cast %23 : vector<1x64x128xf32> to vector<64x128xf32>
    %cst_13 = arith.constant dense<0.000000e+00> : vector<16x128xf32>
    %25 = tpu.matmul %15, %24, %cst_13 {dimension_numbers = #tpu.dot_dimension_numbers<[1], [0], [0], [1], [0, 0, 1, 1], [], []>} : vector<16x64xf32>, vector<64x128xf32>, vector<16x128xf32> -> vector<16x128xf32>
    %26 = arith.addf %22, %25 : vector<16x128xf32>
    %c0_14 = arith.constant 0 : index
    %c0_15 = arith.constant 0 : index
    %27 = vector.load %arg3[%c0_14, %c0_15] : memref<1x128xf32, #tpu.memory_space<vmem>>, vector<1x128xf32>
    %28 = vector.broadcast %27 : vector<1x128xf32> to vector<16x128xf32>
    %29 = arith.addf %26, %28 : vector<16x128xf32>
    %cst_16 = arith.constant 0.000000e+00 : f32
    %30 = vector.broadcast %cst_16 : f32 to vector<16x128xf32>
    %31 = arith.maximumf %29, %30 : vector<16x128xf32>
    %c1_i32_17 = arith.constant 1 : i32
    %32 = tpu.dynamic_rotate %31 by %c1_i32_17 dim 0 : vector<16x128xf32>, i32 -> vector<16x128xf32>
    %33 = tpu.iota {dimensions = array<i32: 0>} : vector<16x128xi32>
    %c0_i32_18 = arith.constant 0 : i32
    %34 = vector.broadcast %c0_i32_18 : i32 to vector<16x128xi32>
    %35 = arith.cmpi eq, %33, %34 : vector<16x128xi32>
    %c0_i32_19 = arith.constant 0 : i32
    %36 = arith.sitofp %c0_i32_19 : i32 to f32
    %37 = vector.broadcast %36 : f32 to vector<16x128xf32>
    %38 = arith.select %35, %37, %32 : vector<16x128xi1>, vector<16x128xf32>
    %c15_i32_20 = arith.constant 15 : i32
    %39 = tpu.dynamic_rotate %31 by %c15_i32_20 dim 0 : vector<16x128xf32>, i32 -> vector<16x128xf32>
    %40 = tpu.iota {dimensions = array<i32: 0>} : vector<16x128xi32>
    %c15_i32_21 = arith.constant 15 : i32
    %41 = vector.broadcast %c15_i32_21 : i32 to vector<16x128xi32>
    %42 = arith.cmpi eq, %40, %41 : vector<16x128xi32>
    %c0_i32_22 = arith.constant 0 : i32
    %43 = arith.sitofp %c0_i32_22 : i32 to f32
    %44 = vector.broadcast %43 : f32 to vector<16x128xf32>
    %45 = arith.select %42, %44, %39 : vector<16x128xi1>, vector<16x128xf32>
    %c0_23 = arith.constant 0 : index
    %c0_24 = arith.constant 0 : index
    %c0_25 = arith.constant 0 : index
    %46 = vector.load %arg4[%c0_23, %c0_24, %c0_25] : memref<3x128x128xf32, #tpu.memory_space<vmem>>, vector<1x128x128xf32>
    %47 = vector.shape_cast %46 : vector<1x128x128xf32> to vector<128x128xf32>
    %cst_26 = arith.constant dense<0.000000e+00> : vector<16x128xf32>
    %48 = tpu.matmul %38, %47, %cst_26 {dimension_numbers = #tpu.dot_dimension_numbers<[1], [0], [0], [1], [0, 0, 1, 1], [], []>} : vector<16x128xf32>, vector<128x128xf32>, vector<16x128xf32> -> vector<16x128xf32>
    %c1_27 = arith.constant 1 : index
    %c0_28 = arith.constant 0 : index
    %c0_29 = arith.constant 0 : index
    %49 = vector.load %arg4[%c1_27, %c0_28, %c0_29] : memref<3x128x128xf32, #tpu.memory_space<vmem>>, vector<1x128x128xf32>
    %50 = vector.shape_cast %49 : vector<1x128x128xf32> to vector<128x128xf32>
    %cst_30 = arith.constant dense<0.000000e+00> : vector<16x128xf32>
    %51 = tpu.matmul %31, %50, %cst_30 {dimension_numbers = #tpu.dot_dimension_numbers<[1], [0], [0], [1], [0, 0, 1, 1], [], []>} : vector<16x128xf32>, vector<128x128xf32>, vector<16x128xf32> -> vector<16x128xf32>
    %52 = arith.addf %48, %51 : vector<16x128xf32>
    %c2_31 = arith.constant 2 : index
    %c0_32 = arith.constant 0 : index
    %c0_33 = arith.constant 0 : index
    %53 = vector.load %arg4[%c2_31, %c0_32, %c0_33] : memref<3x128x128xf32, #tpu.memory_space<vmem>>, vector<1x128x128xf32>
    %54 = vector.shape_cast %53 : vector<1x128x128xf32> to vector<128x128xf32>
    %cst_34 = arith.constant dense<0.000000e+00> : vector<16x128xf32>
    %55 = tpu.matmul %45, %54, %cst_34 {dimension_numbers = #tpu.dot_dimension_numbers<[1], [0], [0], [1], [0, 0, 1, 1], [], []>} : vector<16x128xf32>, vector<128x128xf32>, vector<16x128xf32> -> vector<16x128xf32>
    %56 = arith.addf %52, %55 : vector<16x128xf32>
    %c0_35 = arith.constant 0 : index
    %c0_36 = arith.constant 0 : index
    %57 = vector.load %arg5[%c0_35, %c0_36] : memref<1x128xf32, #tpu.memory_space<vmem>>, vector<1x128xf32>
    %58 = vector.broadcast %57 : vector<1x128xf32> to vector<16x128xf32>
    %59 = arith.addf %56, %58 : vector<16x128xf32>
    %cst_37 = arith.constant 0.000000e+00 : f32
    %60 = vector.broadcast %cst_37 : f32 to vector<16x128xf32>
    %61 = arith.maximumf %59, %60 : vector<16x128xf32>
    %c0_38 = arith.constant 0 : index
    %c0_39 = arith.constant 0 : index
    %c0_40 = arith.constant 0 : index
    %62 = vector.load %arg6[%c0_38, %c0_39, %c0_40] : memref<1x16x128xf32, #tpu.memory_space<vmem>>, vector<1x16x128xf32>
    %63 = vector.shape_cast %62 : vector<1x16x128xf32> to vector<16x128xf32>
    %64 = vector.shape_cast %61 : vector<16x128xf32> to vector<1x16x128xf32>
    tpu.vector_store %arg6[%c0_38, %c0_39, %c0_40], %64 {strides = array<i32>} : memref<1x16x128xf32, #tpu.memory_space<vmem>>, vector<1x16x128xf32>,
    return
  }
  func.func @transform_0(%arg0: i32) -> (i32, i32, i32) {
    %c0_i32 = arith.constant 0 : i32
    %c0_i32_0 = arith.constant 0 : i32
    %c0_i32_1 = arith.constant 0 : i32
    return %arg0, %c0_i32, %c0_i32_0 : i32, i32, i32
  }
  func.func @transform_1(%arg0: i32) -> (i32, i32, i32) {
    %c0_i32 = arith.constant 0 : i32
    %c0_i32_0 = arith.constant 0 : i32
    %c0_i32_1 = arith.constant 0 : i32
    %c0_i32_2 = arith.constant 0 : i32
    return %c0_i32, %c0_i32_0, %c0_i32_1 : i32, i32, i32
  }
  func.func @transform_2(%arg0: i32) -> (i32, i32) {
    %c0_i32 = arith.constant 0 : i32
    %c0_i32_0 = arith.constant 0 : i32
    %c0_i32_1 = arith.constant 0 : i32
    return %c0_i32, %c0_i32_0 : i32, i32
  }
  func.func @transform_3(%arg0: i32) -> (i32, i32, i32) {
    %c0_i32 = arith.constant 0 : i32
    %c0_i32_0 = arith.constant 0 : i32
    %c0_i32_1 = arith.constant 0 : i32
    %c0_i32_2 = arith.constant 0 : i32
    return %c0_i32, %c0_i32_0, %c0_i32_1 : i32, i32, i32
  }
  func.func @transform_4(%arg0: i32) -> (i32, i32) {
    %c0_i32 = arith.constant 0 : i32
    %c0_i32_0 = arith.constant 0 : i32
    %c0_i32_1 = arith.constant 0 : i32
    return %c0_i32, %c0_i32_0 : i32, i32
  }
  func.func @transform_5(%arg0: i32) -> (i32, i32, i32) {
    %c0_i32 = arith.constant 0 : i32
    %c0_i32_0 = arith.constant 0 : i32
    %c0_i32_1 = arith.constant 0 : i32
    return %arg0, %c0_i32, %c0_i32_0 : i32, i32, i32
  }
}

</mosaic_0001>

<bundles_post_ra>
// kernel: tpu_custom_call.1
= control target key start
LH: loop header
LB: loop body
LE: loop exit
PB: predicated region body
PF: predicated region fallthrough
CT: control target
= control target key end

     0   :  { %10 = vsyncpa [#allocation3], 0  ;;  %s1993_s0 = inlined_call_operand.hbm [shape: f32[2,16,64], index: 0, kind: input, shape index: {}]   ;;  %s1994_s1 = inlined_call_operand.hbm [shape: f32[3,64,128], index: 1, kind: input, shape index: {}]   ;;  %s1995_s2 = inlined_call_operand.vmem [shape: f32[1,128], index: 2, kind: input, shape index: {}]   ;;  %s1996_s3 = inlined_call_operand.hbm [shape: f32[3,128,128], index: 3, kind: input, shape index: {}]   ;;  %s1997_s4 = inlined_call_operand.vmem [shape: f32[1,128], index: 4, kind: input, shape index: {}]   ;;  %s1998_s5 = inlined_call_operand.hbm [shape: f32[2,16,128], index: 5, kind: output, shape index: {}]  }
   0x1   :  { %12 = vsyncpa [#allocation3 + $0x1], 0 }
   0x2   :  { %13 = vsyncpa [#allocation6], 0 }
   0x3   :  { %14 = vsyncpa [#allocation4], 0 }
   0x4   :  { %16 = vsyncpa [#allocation4 + $0x1], 0  ;;  %s1683_s18 = smov 0   ;;  %s1685_s19 = smov 0  }
   0x5   :  { %s1687_s20 = smov 0   ;;  %s1689_s21 = smov 0  }
   0x6 LB: > { %s1704_s22 = sadd.s32 4294967295, %s1643_s21   ;;  %s986_s23 = sadd.s32 4294967294, %s1643_s21   ;;  %s1643_s21 = sphi %s1689_s21, %s2018_s21   ;;  %s1639_s20 = sphi %s1687_s20, %s2017_s20   ;;  %s1635_s19 = sphi %s1685_s19, %s2016_s19   ;;  %s1631_s18 = sphi %s1683_s18, %s2015_s18  }
   0x7   : > { %p42_p0 = scmp.ne.s32.totalorder %s1635_s19, %s1631_s18  ;;  %p1999_p1 = scmp.eq.s32.totalorder %s1704_s22, 0 }
   0x8   : > { %p156_p3 = scmp.eq.s32.totalorder %s986_s23, 1  ;;  %p987_p5 = scmp.ge.s32.totalorder %s1643_s21, 1 }
   0x9   : > { %p1713_p4 = por %p1999_p1, %p42_p0  ;;  %p163_p7 = scmp.lt.s32.totalorder %s1643_s21, 3 }
   0xa   : > { %p1718_p6 = por %p156_p3, %p42_p0  ;;  %s1645_s27 = smov [#allocation5]  }
   0xb   : > { %s2002_s24 = scalar_select %p1713_p4, 1, 0 }
   0xc   : > { %s2003_s25 = scalar_select %p1718_p6, 1, 0 }
   0xd   : > { %p1723_p8 = pnand %p987_p5, %p163_p7  ;;  %s175_s28 = sshll.u32 %s1645_s27, 4  ;;  %s1727_s28 = int_to_ptr.vmem [resolvable:$true] %s175_s28 }
   0xe   : > { %s1646_s30 = smov [#allocation7]   ;;  %s1487_s9 = scalar_lea.hbm %s1994_s1, 3072 }
   0xf   : > { %p1428_p9 = pneg %p1723_p8  ;;  %s191_s6 = sshll.u32 %s1646_s30, 4  ;;  %s1738_s6 = int_to_ptr.vmem [resolvable:$true] %s191_s6 }
  0x10   : > { %p1488_p12 = scmp.ne.s32.totalorder %s1994_s1, %s1487_s9  ;;  %p1494_p5 = scmp.lt.u32.totalorder %s1487_s9, %s1994_s1 }
  0x11   : > { %p1734_p11 = pnand %p1428_p9, %p1999_p1 }
  0x13   : > { %p1489_p13 = pneg %p1734_p11 }
  0x15   : > { %p1490_p0 = pnand %p1489_p13, %p1488_p12 }
  0x17   : > { %p1491_p3 = pneg %p1490_p0 }
  0x19   : > { %p1496_p7 = pnand %p1494_p5, %p1491_p3 }
  0x1b   : > { %1499 = shalt.err (!%p1496_p7)
}
  0x1c   : > { %s1500_s14 = scalar_lea.vmem %s1727_s28, 3072  ;;  %p1508_p2 = scmp.lt.s32.totalorder %s1727_s28, %s1727_s28 }
  0x1d   : > { %p1501_p9 = scmp.ne.s32.totalorder %s1727_s28, %s1500_s14  ;;  %p1509_p12 = scmp.lt.s32.totalorder %s1500_s14, %s1500_s14 }
  0x1f   : > { %p1503_p10 = pnand %p1501_p9, %p1489_p13  ;;  %p1510_p0 = por %p1509_p12, %p1508_p2 }
  0x21   : > { %p1504_p1 = pneg %p1503_p10 }
  0x23   : > { %p1511_p6 = pnand %p1510_p0, %p1504_p1 }
  0x25   : > { %1514 = shalt.err (!%p1511_p6)
}
  0x26   : > { %s1647_s15 = smov 128   ;;  %s1648_s16 = smov 8  }
  0x27   : > { %1431 = dma.hbm_to_vmem [thread:$0]  (!%p1734_p11), %s1994_s1, 3072, %s1727_s28, [#allocation6], %s1647_s15, %s1647_s15, %s1648_s16  }
  0x28   : > { %s1515_s7 = scalar_lea.hbm %s1996_s3, 6144 }
  0x29   : > { %p1516_p1 = scmp.ne.s32.totalorder %s1996_s3, %s1515_s7  ;;  %p1522_p10 = scmp.lt.u32.totalorder %s1515_s7, %s1996_s3 }
  0x2b   : > { %p1518_p2 = pnand %p1516_p1, %p1489_p13 }
  0x2d   : > { %p1519_p6 = pneg %p1518_p2 }
  0x2f   : > { %p1524_p3 = pnand %p1522_p10, %p1519_p6 }
  0x31   : > { %1527 = shalt.err (!%p1524_p3)
}
  0x32   : > { %s1528_s28 = scalar_lea.vmem %s1738_s6, 6144  ;;  %p1536_p12 = scmp.lt.s32.totalorder %s1738_s6, %s1738_s6 }
  0x33   : > { %p1529_p5 = scmp.ne.s32.totalorder %s1738_s6, %s1528_s28  ;;  %p1537_p0 = scmp.lt.s32.totalorder %s1528_s28, %s1528_s28 }
  0x35   : > { %p1531_p7 = pnand %p1529_p5, %p1489_p13  ;;  %p1538_p1 = por %p1537_p0, %p1536_p12 }
  0x37   : > { %p1532_p9 = pneg %p1531_p7 }
  0x39   : > { %p1539_p2 = pnand %p1538_p1, %p1532_p9 }
  0x3b   : > { %1542 = shalt.err (!%p1539_p2)
}
  0x3c   : > { %1434 = dma.hbm_to_vmem [thread:$0]  (!%p1734_p11), %s1996_s3, 6144, %s1738_s6, [#allocation6], %s1647_s15, %s1647_s15, %s1648_s16  }
  0x3d   : > { %s1799_s29 = sadd.s32 1, %s1643_s21   ;;  %s29_s14 = sadd.s32 1, %s1639_s20 }
  0x3e   : > { %s26_s17 = ssub.s32 %s1643_s21, %s1799_s29  ;;  %p36_p13 = scmp.ne.s32.totalorder %s1639_s20, %s1635_s19 }
  0x3f   : > { %p27_p6 = scmp.eq.s32.totalorder %s26_s17, 0  ;;  %p37_p10 = scmp.eq.s32.totalorder %s1643_s21, 0 }
  0x40   : > { %p2006_p3 = scmp.eq.s32.totalorder %s1704_s22, 1  ;;  %p1445_p7 = scmp.lt.s32.totalorder %s1643_s21, 2 }
  0x41   : > { %s1815_s27 = scalar_select %p27_p6, %s1639_s20, %s29_s14  }
  0x42   : > { %p1809_p5 = por %p2006_p3, %p36_p13  ;;  %p38_p9 = por %p37_p10, %p36_p13 }
  0x43   : > { %s208_s30 = sand.u32 1, %s1639_s20   ;;  %s1016_s6 = sshll.u32 %s1643_s21, 8 }
  0x44   : > { %s2007_s23 = scalar_select %p1809_p5, 1, 0 }
  0x45   : > { %s991_s7 = sshll.u32 %s208_s30, 4  ;;  %s1822_s10 = scalar_lea.hbm %s1993_s0, %s1016_s6 }
  0x46   : > { %s212_s11 = scalar_lea.vmem [#allocation2], %s991_s7  ;;  %p1826_p11 = pnand %p1445_p7, %p38_p9 }
  0x47   : > { %s219_s28 = sshll.u32 %s212_s11, 4  ;;  %s1830_s13 = scalar_lea.sflag [#allocation3], %s208_s30  ;;  %s1824_s28 = int_to_ptr.vmem [resolvable:$true] %s219_s28 }
  0x48   : > { %s1543_s14 = scalar_lea.hbm %s1822_s10, 256  ;;  %p1545_p0 = pneg %p1826_p11 }
  0x49   : > { %p1544_p12 = scmp.ne.s32.totalorder %s1822_s10, %s1543_s14  ;;  %s1548_s6 = scalar_lea.hbm %s1993_s0, 512 }
  0x4a   : > { %p1549_p13 = scmp.lt.u32.totalorder %s1822_s10, %s1993_s0  ;;  %p1550_p6 = scmp.lt.u32.totalorder %s1548_s6, %s1543_s14 }
  0x4b   : > { %p1546_p1 = pnand %p1545_p0, %p1544_p12  ;;  %p1552_p3 = scmp.lt.u32.totalorder %s1543_s14, %s1822_s10 }
  0x4c   : > { %p1551_p10 = por %p1550_p6, %p1549_p13 }
  0x4d   : > { %p1547_p2 = pneg %p1546_p1 }
  0x4e   : > { %p1553_p7 = por %p1552_p3, %p1551_p10 }
  0x50   : > { %p1554_p9 = pnand %p1553_p7, %p1547_p2 }
  0x52   : > { %1557 = shalt.err (!%p1554_p9)
}
  0x53   : > { %s1558_s30 = scalar_lea.vmem %s1824_s28, 256  ;;  %s1649_s11 = smov [#allocation2]  }
  0x54   : > { %p1559_p12 = scmp.ne.s32.totalorder %s1824_s28, %s1558_s30  ;;  %s1563_s17 = sshll.u32 %s1649_s11, 4  ;;  %s1564_s17 = int_to_ptr.vmem [resolvable:$false] %s1563_s17 }
  0x55   : > { %s1565_s7 = scalar_lea.vmem %s1564_s17, 512  ;;  %p1566_p4 = scmp.lt.s32.totalorder %s1824_s28, %s1564_s17 }
  0x56   : > { %p1561_p1 = pnand %p1559_p12, %p1545_p0  ;;  %p1567_p13 = scmp.lt.s32.totalorder %s1565_s7, %s1558_s30 }
  0x58   : > { %p1562_p5 = pneg %p1561_p1  ;;  %p1568_p6 = por %p1567_p13, %p1566_p4 }
  0x5a   : > { %p1569_p10 = pnand %p1568_p6, %p1562_p5 }
  0x5c   : > { %1572 = shalt.err (!%p1569_p10)
}
  0x5d   : > { %1438 = dma.hbm_to_vmem [thread:$0]  (!%p1826_p11), %s1822_s10, 256, %s1824_s28, %s1830_s13, %s1647_s15, %s1647_s15, %s1648_s16  }
  0x5e   : > { %231 = sbr.rel (%p1723_p8) target bundleno = 643 (0x283), region = 40  ;;  %s1864_s14 = sand.u32 (!%p1723_p8), 1, %s1635_s19  }
  0x5f   : > { %s995_s6 = sshll.u32 (!%p1723_p8), %s1864_s14, 4  ;;  %s234_s8 = scalar_lea.sflag (!%p1723_p8), [#allocation3], %s1864_s14 }
  0x60   : > { %s237_s12 = scalar_lea.vmem (!%p1723_p8), [#allocation2], %s995_s6  ;;  %p2009_p4 = scmp.ne.s32.totalorder (!%p1723_p8), %s2002_s24, 0 }
  0x65   : > { %1618 = dma.done.wait (%p2009_p4), %s234_s8, 256  }
  0x66   : > { %1620 = vsyncadd (%p2009_p4), %s234_s8, 4294967040  ;;  %p2010_p5 = scmp.eq.s32.totalorder %s1704_s22, 0 }
  0x68   : > { %1622 = dma.done.wait (%p2010_p5), [#allocation6], 9216   ;;  %p2011_p8 = pmov %p2010_p5 }
  0x69   : > { %v304_v0 = vld [vmem:[#allocation5 + $0x40] sm:$0xff]  ;;  %v305_v1 = vld [vmem:[#allocation5 + $0x48] sm:$0xff]  ;;  %v306_v2 = vld [vmem:[#allocation5 + $0x50] sm:$0xff]  ;;  %vm312_vm0 = vcmask 523264   ;;  %v276_v9 = vlaneseq  ;;  %s271_s10 = scalar_lea.vmem [#allocation8], %s995_s6  ;;  %s1017_s13 = sshll.u32 %s1704_s22, 8 }
  0x6a   : > { %1624 = vsyncadd (%p2011_p8), [#allocation6], 4294958080  ;;  %v1264_v3 = vpack.c.bf16 %v305_v1, %v304_v0  ;;  %v307_v4 = vld [vmem:[#allocation5 + $0x58] sm:$0xff]  ;;  %v308_v6 = vld [vmem:[#allocation5 + $0x60] sm:$0xff]  ;;  %s894_s28 = sshll.u32 %s271_s10, 4  ;;  %s1949_s11 = scalar_lea.hbm %s1998_s5, %s1017_s13  ;;  %s1944_s28 = int_to_ptr.vmem [resolvable:$true] %s894_s28 }
  0x6b   : > { %v1268_v5 = vpack.c.bf16 %v307_v4, %v306_v2  ;;  %v309_v7 = vld [vmem:[#allocation5 + $0x68] sm:$0xff]  ;;  %v1878_v8 = vld [vmem:[%s237_s12] sm:$0xff]  ;;  %v311_v12 = vld [vmem:[#allocation5 + $0x78] sm:$0xff]  ;;  %v1882_v13 = vshrl.u32 %v276_v9, 7  ;;  %s881_s17 = scalar_lea.sflag [#allocation4], %s1864_s14  ;;  %s1573_s7 = scalar_lea.vmem %s1944_s28, 256 }
  0x6c   : > { %1265 = vmatprep.subr.bf16.mxu0 %v1264_v3  ;;  %1118 = vmatprep.mubr.msk.f32.mxu0 %vm312_vm0, %v1878_v8  ;;  %v1272_v10 = vpack.c.bf16 %v309_v7, %v308_v6  ;;  %v310_v11 = vld [vmem:[#allocation5 + $0x70] sm:$0xff]  ;;  %v1884_v15 = vld [vmem:[%s237_s12 + $0x8] sm:$0xff]  ;;  %v590_v16 = vld [vmem:[#allocation7] sm:$0xff]  ;;  %v274_v18 = vrot.slane %v1878_v8, 7  ;;  %v286_v52 = vrot.slane %v1878_v8, 1  ;;  %p1574_p11 = scmp.ne.s32.totalorder %s1944_s28, %s1573_s7  ;;  %p2012_p0 = scmp.ne.s32.totalorder %s2007_s23, 0 }
  0x6d   : > { %1267 = vmatpush3.bf16.msra.mxu0 %v1264_v3  ;;  %v1276_v14 = vpack.c.bf16 %v311_v12, %v310_v11  ;;  %v591_v17 = vld [vmem:[#allocation7 + $0x8] sm:$0xff]  ;;  %v295_v19 = vld [vmem:[#allocation5] sm:$0xff]  ;;  %v275_v21 = vrot.slane %v1884_v15, 7  ;;  %v592_v23 = vld [vmem:[#allocation7 + $0x10] sm:$0xff]  ;;  %vm278_vm1 = vcmp.lt.s32.totalorder %v1882_v13, 1  ;;  %vm282_vm2 = vcmp.eq.s32.totalorder %v1882_v13, 0 }
  0x6e   : > { %1269 = vmatprep.subr.bf16.mxu0 %v1268_v5  ;;  %v296_v20 = vld [vmem:[#allocation5 + $0x8] sm:$0xff]  ;;  %v1344_v22 = vpack.c.bf16 %v591_v17, %v590_v16  ;;  %v593_v24 = vld [vmem:[#allocation7 + $0x18] sm:$0xff]  ;;  %v594_v26 = vld [vmem:[#allocation7 + $0x20] sm:$0xff]  ;;  %v287_v53 = vrot.slane %v1884_v15, 1  ;;  %vm288_vm3 = vcmp.lt.s32.totalorder %v1882_v13, 7  ;;  %v1915_v2 = vadd.s32 8, %v1882_v13  ;;  %p1575_p2 = pnand %p1574_p11, %p2012_p0 }
  0x6f   : > { %v1348_v25 = vpack.c.bf16 %v593_v24, %v592_v23  ;;  %v595_v27 = vld [vmem:[#allocation7 + $0x28] sm:$0xff]  ;;  %v1280_v28 = vpack.c.bf16 %v296_v20, %v295_v19  ;;  %v297_v29 = vld [vmem:[#allocation5 + $0x10] sm:$0xff]  ;;  %v298_v30 = vld [vmem:[#allocation5 + $0x18] sm:$0xff]  ;;  %v280_v31 = vsel %vm278_vm1, %v275_v21, %v274_v18  ;;  %v279_v57 = vsel %vm278_vm1, %v274_v18, %v275_v21  ;;  %s1650_s22 = smov [#allocation8]  }
  0x70   : > { %1345 = vmatprep.subr.bf16.mxu1 %v1344_v22  ;;  %v1352_v32 = vpack.c.bf16 %v595_v27, %v594_v26  ;;  %v596_v33 = vld [vmem:[#allocation7 + $0x30] sm:$0xff]  ;;  %v597_v34 = vld [vmem:[#allocation7 + $0x38] sm:$0xff]  ;;  %v1284_v35 = vpack.c.bf16 %v298_v30, %v297_v29  ;;  %v284_v36 = vsel %vm282_vm2, 0.0, %v280_v31  ;;  %v299_v37 = vld [vmem:[#allocation5 + $0x20] sm:$0xff]  ;;  %v289_v59 = vsel %vm288_vm3, %v286_v52, %v287_v53  ;;  %p1576_p3 = pneg %p1575_p2  ;;  %s1577_s6 = sshll.u32 %s1650_s22, 4  ;;  %s1578_s6 = int_to_ptr.vmem [resolvable:$false] %s1577_s6 }
  0x71   : > { %1271 = vmatpush3.bf16.msra.mxu0 %v1268_v5  ;;  %1347 = vmatpush3.bf16.msra.mxu1 %v1344_v22  ;;  %v300_v38 = vld [vmem:[#allocation5 + $0x28] sm:$0xff]  ;;  %v1356_v39 = vpack.c.bf16 %v597_v34, %v596_v33  ;;  %v598_v40 = vld [vmem:[#allocation7 + $0x40] sm:$0xff]  ;;  %v301_v43 = vld [vmem:[#allocation5 + $0x30] sm:$0xff]  ;;  %v290_v5 = vsel %vm288_vm3, %v287_v53, %v286_v52  ;;  %vm292_vm4 = vcmp.eq.s32.totalorder %v1915_v2, 15  ;;  %s1579_s8 = scalar_lea.vmem %s1578_s6, 512  ;;  %p1580_p7 = scmp.lt.s32.totalorder %s1944_s28, %s1578_s6 }
  0x72   : > { %1273 = vmatprep.subr.bf16.mxu0 %v1272_v10  ;;  %1349 = vmatprep.subr.bf16.mxu1 %v1348_v25  ;;  %v599_v41 = vld [vmem:[#allocation7 + $0x48] sm:$0xff]  ;;  %v1288_v42 = vpack.c.bf16 %v300_v38, %v299_v37  ;;  %v302_v44 = vld [vmem:[#allocation5 + $0x38] sm:$0xff]  ;;  %v600_v46 = vld [vmem:[#allocation7 + $0x50] sm:$0xff]  ;;  %v294_v9 = vsel %vm292_vm4, 0.0, %v290_v5  ;;  %p1581_p9 = scmp.lt.s32.totalorder %s1579_s8, %s1573_s7 }
  0x73   : > { %v1360_v45 = vpack.c.bf16 %v599_v41, %v598_v40  ;;  %v601_v47 = vld [vmem:[#allocation7 + $0x58] sm:$0xff]  ;;  %v1292_v48 = vpack.c.bf16 %v302_v44, %v301_v43  ;;  %v476_v49 = vld [vmem:[#allocation5 + $0x80] sm:$0xff]  ;;  %v477_v50 = vld [vmem:[#allocation5 + $0x88] sm:$0xff] }
  0x74   : > { %v1364_v51 = vpack.c.bf16 %v601_v47, %v600_v46  ;;  %v1296_v54 = vpack.c.bf16 %v477_v50, %v476_v49  ;;  %v478_v55 = vld [vmem:[#allocation5 + $0x90] sm:$0xff]  ;;  %v479_v56 = vld [vmem:[#allocation5 + $0x98] sm:$0xff]  ;;  %v480_v60 = vld [vmem:[#allocation5 + $0xa0] sm:$0xff]  ;;  %p1582_p12 = por %p1581_p9, %p1580_p7 }
  0x75   : > { %1275 = vmatpush3.bf16.msra.mxu0 %v1272_v10  ;;  %1351 = vmatpush3.bf16.msra.mxu1 %v1348_v25  ;;  %v1300_v58 = vpack.c.bf16 %v479_v56, %v478_v55  ;;  %v481_v61 = vld [vmem:[#allocation5 + $0xa8] sm:$0xff]  ;;  %v482_v63 = vld [vmem:[#allocation5 + $0xb0] sm:$0xff]  ;;  %v483_v0 = vld [vmem:[#allocation5 + $0xb8] sm:$0xff] }
  0x76   : > { %1277 = vmatprep.subr.bf16.mxu0 %v1276_v14  ;;  %1353 = vmatprep.subr.bf16.mxu1 %v1352_v32  ;;  %v1304_v62 = vpack.c.bf16 %v481_v61, %v480_v60  ;;  %v1308_v1 = vpack.c.bf16 %v483_v0, %v482_v63  ;;  %v607_v3 = vld [vmem:[#allocation7 + $0x80] sm:$0xff]  ;;  %v608_v4 = vld [vmem:[#allocation7 + $0x88] sm:$0xff]  ;;  %v609_v7 = vld [vmem:[#allocation7 + $0x90] sm:$0xff]  ;;  %p1583_p1 = pnand %p1582_p12, %p1576_p3 }
  0x77   : > { %v1312_v6 = vpack.c.bf16 %v608_v4, %v607_v3  ;;  %v610_v8 = vld [vmem:[#allocation7 + $0x98] sm:$0xff]  ;;  %v611_v11 = vld [vmem:[#allocation7 + $0xa0] sm:$0xff]  ;;  %v612_v12 = vld [vmem:[#allocation7 + $0xa8] sm:$0xff] }
  0x78   : > { %v1316_v10 = vpack.c.bf16 %v610_v8, %v609_v7  ;;  %v614_v16 = vld [vmem:[#allocation7 + $0xb8] sm:$0xff]  ;;  %v615_v18 = vld [vmem:[#allocation7 + $0xc0] sm:$0xff]  ;;  %v616_v19 = vld [vmem:[#allocation7 + $0xc8] sm:$0xff] }
  0x79   : > { %1279 = vmatpush3.bf16.msra.mxu0 %v1276_v14  ;;  %1355 = vmatpush3.bf16.msra.mxu1 %v1352_v32  ;;  %v1320_v14 = vpack.c.bf16 %v612_v12, %v611_v11  ;;  %v1328_v20 = vpack.c.bf16 %v616_v19, %v615_v18  ;;  %v617_v21 = vld [vmem:[#allocation7 + $0xd0] sm:$0xff]  ;;  %v618_v22 = vld [vmem:[#allocation7 + $0xd8] sm:$0xff]  ;;  %v619_v24 = vld [vmem:[#allocation7 + $0xe0] sm:$0xff] }
  0x7a   : > { %1281 = vmatprep.subr.bf16.mxu0 %v1280_v28  ;;  %1357 = vmatprep.subr.bf16.mxu1 %v1356_v39  ;;  %v1332_v23 = vpack.c.bf16 %v618_v22, %v617_v21  ;;  %v620_v25 = vld [vmem:[#allocation7 + $0xe8] sm:$0xff]  ;;  %v602_v27 = vld [vmem:[#allocation7 + $0x60] sm:$0xff]  ;;  %v621_v30 = vld [vmem:[#allocation7 + $0xf0] sm:$0xff] }
  0x7b   : > { %v1336_v26 = vpack.c.bf16 %v620_v25, %v619_v24  ;;  %v622_v31 = vld [vmem:[#allocation7 + $0xf8] sm:$0xff]  ;;  %v604_v33 = vld [vmem:[#allocation7 + $0x70] sm:$0xff]  ;;  %v775_v37 = vld [vmem:[#allocation7 + $0x108] sm:$0xff] }
  0x7c   : > { %1119 = vmatmul.mubr.msk.f32.vlgmr.msra.gmra.mrb[0].mxu0 %vm312_vm0, %v1884_v15  ;;  %v613_v15 = vld [vmem:[#allocation7 + $0xb0] sm:$0xff]  ;;  %v1340_v32 = vpack.c.bf16 %v622_v31, %v621_v30  ;;  %v605_v34 = vld [vmem:[#allocation7 + $0x78] sm:$0xff]  ;;  %vm1006_vm5 = vmneg %vm282_vm2 }
  0x7d   : > { %1283 = vmatpush3.bf16.msra.mxu0 %v1280_v28  ;;  %1137 = vmatprep.mubr.msk.f32.mxu0 %vm312_vm0, %v284_v36  ;;  %v1324_v17 = vpack.c.bf16 %v614_v16, %v613_v15  ;;  %v603_v28 = vld [vmem:[#allocation7 + $0x68] sm:$0xff]  ;;  %v774_v36 = vld [vmem:[#allocation7 + $0x100] sm:$0xff]  ;;  %v776_v46 = vld [vmem:[#allocation7 + $0x110] sm:$0xff] }
  0x7e   : > { %1285 = vmatprep.subr.bf16.mxu0 %v1284_v35  ;;  %1359 = vmatpush3.bf16.msra.mxu1 %v1356_v39  ;;  %v1368_v29 = vpack.c.bf16 %v603_v28, %v602_v27  ;;  %v1376_v38 = vpack.c.bf16 %v775_v37, %v774_v36  ;;  %v1005_v39 = vld [vmem:[%s1995_s2] ss:$0 sm:$0xff]  ;;  %v777_v47 = vld [vmem:[#allocation7 + $0x118] sm:$0xff]  ;;  %v780_v60 = vld [vmem:[#allocation7 + $0x130] sm:$0xff] }
  0x7f   : > { %1361 = vmatprep.subr.bf16.mxu1 %v1360_v45  ;;  %v1380_v52 = vpack.c.bf16 %v777_v47, %v776_v46  ;;  %v781_v61 = vld [vmem:[#allocation7 + $0x138] sm:$0xff]  ;;  %v782_v63 = vld [vmem:[#allocation7 + $0x140] sm:$0xff]  ;;  %v783_v0 = vld [vmem:[#allocation7 + $0x148] sm:$0xff] }
  0x80   : > { %v784_v13 = vld [vmem:[#allocation7 + $0x150] sm:$0xff]  ;;  %v785_v3 = vld [vmem:[#allocation7 + $0x158] sm:$0xff]  ;;  %v786_v5 = vld [vmem:[#allocation7 + $0x160] sm:$0xff] }
  0x81   : > { %1287 = vmatpush3.bf16.msra.mxu0 %v1284_v35  ;;  %v1372_v35 = vpack.c.bf16 %v605_v34, %v604_v33  ;;  %v1396_v4 = vpack.c.bf16 %v785_v3, %v784_v13  ;;  %v788_v8 = vld [vmem:[#allocation7 + $0x170] sm:$0xff]  ;;  %vm1008_vm6 = vmneg %vm292_vm4  ;;  %v1010_v15 = vld [vmem:[%s1997_s4] ss:$0 sm:$0xff] }
  0x82   : > { %1289 = vmatprep.subr.bf16.mxu0 %v1288_v42  ;;  %1363 = vmatpush3.bf16.msra.mxu1 %v1360_v45 }
  0x83   : > { %1365 = vmatprep.subr.bf16.mxu1 %v1364_v51 }
  0x85   : > { %1291 = vmatpush3.bf16.msra.mxu0 %v1288_v42 }
  0x86   : > { %1293 = vmatprep.subr.bf16.mxu0 %v1292_v48  ;;  %1367 = vmatpush3.bf16.msra.mxu1 %v1364_v51 }
  0x87   : > { %1369 = vmatprep.subr.bf16.mxu1 %v1368_v29 }
  0x89   : > { %1295 = vmatpush3.bf16.msra.mxu0 %v1292_v48 }
  0x8a   : > { %1297 = vmatprep.subr.bf16.mxu0 %v1296_v54  ;;  %1371 = vmatpush3.bf16.msra.mxu1 %v1368_v29 }
  0x8b   : > { %1373 = vmatprep.subr.bf16.mxu1 %v1372_v35 }
  0x8c   : > { %1138 = vmatmul.mubr.msk.f32.vlgmr.msra.gmra.mrb[0].mxu0 %vm312_vm0, %v279_v57  ;;  %v778_v57 = vld [vmem:[#allocation7 + $0x120] sm:$0xff] }
  0x8d   : > { %1299 = vmatpush3.bf16.msra.mxu0 %v1296_v54  ;;  %1156 = vmatprep.mubr.msk.f32.mxu0 %vm312_vm0, %v289_v59 }
  0x8e   : > { %1301 = vmatprep.subr.bf16.mxu0 %v1300_v58  ;;  %1375 = vmatpush3.bf16.msra.mxu1 %v1372_v35 }
  0x8f   : > { %1377 = vmatprep.subr.bf16.mxu1 %v1376_v38 }
  0x91   : > { %1303 = vmatpush3.bf16.msra.mxu0 %v1300_v58  ;;  %v779_v58 = vld [vmem:[#allocation7 + $0x128] sm:$0xff] }
  0x92   : > { %1305 = vmatprep.subr.bf16.mxu0 %v1304_v62  ;;  %v1384_v59 = vpack.c.bf16 %v779_v58, %v778_v57 }
  0x95   : > { %1307 = vmatpush3.bf16.msra.mxu0 %v1304_v62  ;;  %v1388_v62 = vpack.c.bf16 %v781_v61, %v780_v60 }
  0x96   : > { %1309 = vmatprep.subr.bf16.mxu0 %v1308_v1 }
  0x99   : > { %1311 = vmatpush3.bf16.msra.mxu0 %v1308_v1  ;;  %v1392_v1 = vpack.c.bf16 %v783_v0, %v782_v63 }
  0x9a   : > { %1313 = vmatprep.subr.bf16.mxu0 %v1312_v6 }
  0x9c   : > { %1157 = vmatmul.mubr.msk.f32.vlgmr.msra.gmra.mrb[0].mxu0 %vm312_vm0, %v294_v9  ;;  %v789_v9 = vld [vmem:[#allocation7 + $0x178] sm:$0xff] }
  0x9d   : > { %1315 = vmatpush3.bf16.msra.mxu0 %v1312_v6  ;;  %v787_v6 = vld [vmem:[#allocation7 + $0x168] sm:$0xff] }
  0x9e   : > { %1317 = vmatprep.subr.bf16.mxu0 %v1316_v10  ;;  %v1400_v7 = vpack.c.bf16 %v787_v6, %v786_v5 }
  0xa1   : > { %1319 = vmatpush3.bf16.msra.mxu0 %v1316_v10  ;;  %v1404_v10 = vpack.c.bf16 %v789_v9, %v788_v8 }
  0xa2   : > { %1321 = vmatprep.subr.bf16.mxu0 %v1320_v14 }
  0xa5   : > { %1323 = vmatpush3.bf16.msra.mxu0 %v1320_v14 }
  0xa6   : > { %1325 = vmatprep.subr.bf16.mxu0 %v1324_v17 }
  0xa9   : > { %1327 = vmatpush3.bf16.msra.mxu0 %v1324_v17 }
  0xaa   : > { %1329 = vmatprep.subr.bf16.mxu0 %v1328_v20 }
  0xad   : > { %1331 = vmatpush3.bf16.msra.mxu0 %v1328_v20 }
  0xae   : > { %1333 = vmatprep.subr.bf16.mxu0 %v1332_v23 }
  0xb1   : > { %1335 = vmatpush3.bf16.msra.mxu0 %v1332_v23 }
  0xb2   : > { %1337 = vmatprep.subr.bf16.mxu0 %v1336_v26 }
  0xb5   : > { %1339 = vmatpush3.bf16.msra.mxu0 %v1336_v26 }
  0xb6   : > { %1341 = vmatprep.subr.bf16.mxu0 %v1340_v32 }
  0xb9   : > { %1343 = vmatpush3.bf16.msra.mxu0 %v1340_v32 }
 0x16f   : > { %v1158_v40 = vpop.f32.mrb[0].mxu0 }
 0x170   : > { %v575_v41 = vadd.f32 %v1158_v40, %v1005_v39  ;;  %v556_v42 = vpop.f32.mrb[1].mxu0 }
 0x171   : > { %v574_v43 = vadd.f32 %v1005_v39, %v556_v42 }
 0x172   : > { %v577_v44 = vmax.f32 %v575_v41, 0.0 }
 0x173   : > { %v576_v45 = vmax.f32 %v574_v43, 0.0 }
 0x174   : > { %v585_v48 = vrot.slane %v577_v44, 1  ;;  %v579_v49 = vrot.slane %v577_v44, 7 }
 0x175   : > { %v584_v50 = vrot.slane %v576_v45, 1  ;;  %1191 = vmatprep.mubr.f32.mxu0 %v576_v45  ;;  %v578_v51 = vrot.slane %v576_v45, 7 }
 0x176   : > { %1192 = vmatmul.mubr.f32.vlgmr.msra.gmra.mrb[2].mxu0 %v577_v44 }
 0x177   : > { %v581_v53 = vsel %vm278_vm1, %v579_v49, %v578_v51  ;;  %v580_v54 = vsel %vm278_vm1, %v578_v51, %v579_v49  ;;  %v586_v55 = vsel %vm288_vm3, %v584_v50, %v585_v48  ;;  %v587_v56 = vsel %vm288_vm3, %v585_v48, %v584_v50 }
 0x178   : > { %1226 = vmatprep.mubr.msk.f32.mxu1 %vm1006_vm5, %v581_v53 }
 0x179   : > { %1227 = vmatmul.mubr.f32.vlgmr.msra.gmra.mrb[0].mxu1 %v580_v54 }
 0x17a   : > { %1379 = vmatpush3.bf16.msra.mxu1 %v1376_v38  ;;  %1261 = vmatprep.mubr.f32.mxu1 %v586_v55 }
 0x17b   : > { %1381 = vmatprep.subr.bf16.mxu1 %v1380_v52 }
 0x17e   : > { %1383 = vmatpush3.bf16.msra.mxu1 %v1380_v52 }
 0x17f   : > { %1385 = vmatprep.subr.bf16.mxu1 %v1384_v59 }
 0x182   : > { %1387 = vmatpush3.bf16.msra.mxu1 %v1384_v59 }
 0x183   : > { %1389 = vmatprep.subr.bf16.mxu1 %v1388_v62 }
 0x186   : > { %1391 = vmatpush3.bf16.msra.mxu1 %v1388_v62 }
 0x187   : > { %1393 = vmatprep.subr.bf16.mxu1 %v1392_v1 }
 0x18a   : > { %1395 = vmatpush3.bf16.msra.mxu1 %v1392_v1 }
 0x18b   : > { %1397 = vmatprep.subr.bf16.mxu1 %v1396_v4 }
 0x18e   : > { %1399 = vmatpush3.bf16.msra.mxu1 %v1396_v4 }
 0x18f   : > { %1401 = vmatprep.subr.bf16.mxu1 %v1400_v7 }
 0x192   : > { %1403 = vmatpush3.bf16.msra.mxu1 %v1400_v7 }
 0x193   : > { %1405 = vmatprep.subr.bf16.mxu1 %v1404_v10 }
 0x196   : > { %1407 = vmatpush3.bf16.msra.mxu1 %v1404_v10 }
 0x199   : > { %1262 = vmatmul.mubr.msk.f32.vlgmr.msra.gmra.mrb[0].mxu1 %vm1008_vm6, %v587_v56 }
 0x249   : > { %v1193_v11 = vpop.f32.mrb[2].mxu0 }
 0x24a   : > { %v689_v12 = vpop.f32.mrb[3].mxu0 }
 0x26c   : > { %v1263_v14 = vpop.f32.mrb[0].mxu1 }
 0x26d   : > { %v1408_v16 = vadd.f32 %v1263_v14, %v1193_v11  ;;  %v856_v17 = vpop.f32.mrb[1].mxu1 }
 0x26e   : > { %v1409_v18 = vadd.f32 %v856_v17, %v689_v12 }
 0x26f   : > { %v875_v19 = vadd.f32 %v1408_v16, %v1010_v15 }
 0x270   : > { %v874_v2 = vadd.f32 %v1409_v18, %v1010_v15 }
 0x271   : > { %v877_v20 = vmax.f32 %v875_v19, 0.0 }
 0x272   : > { %v876_v21 = vmax.f32 %v874_v2, 0.0 }
 0x273   : > { %879 = vst [vmem:[%s271_s10 + $0x8] sm:$0xff] %v877_v20 }
 0x274   : > { %878 = vst [vmem:[%s271_s10] sm:$0xff] %v876_v21 }
 0x275   : > { %1586 = shalt.err (!%p1583_p1)
}
 0x276   : > { %s1587_s12 = scalar_lea.hbm %s1949_s11, 256  ;;  %s1591_s15 = scalar_lea.hbm %s1998_s5, 512 }
 0x277   : > { %p1588_p13 = scmp.ne.s32.totalorder %s1949_s11, %s1587_s12  ;;  %p1592_p4 = scmp.lt.u32.totalorder %s1949_s11, %s1998_s5 }
 0x278   : > { %p1593_p5 = scmp.lt.u32.totalorder %s1591_s15, %s1587_s12  ;;  %p1595_p11 = scmp.lt.u32.totalorder %s1587_s12, %s1949_s11 }
 0x279   : > { %p1589_p6 = pnand %p1588_p13, %p2012_p0 }
 0x27a   : > { %p1594_p8 = por %p1593_p5, %p1592_p4 }
 0x27b   : > { %p1590_p10 = pneg %p1589_p6 }
 0x27c   : > { %p1596_p2 = por %p1595_p11, %p1594_p8 }
 0x27e   : > { %p1597_p3 = pnand %p1596_p2, %p1590_p10 }
 0x280   : > { %1600 = shalt.err (!%p1597_p3)
}
 0x281   : > { %s1651_s13 = smov 128   ;;  %s1652_s9 = smov 8  }
 0x282   : > { %1426 = dma.vmem_to_hbm [thread:$0]  (%p2012_p0), %s1944_s28, 256, %s1949_s11, %s881_s17, %s1651_s13, %s1651_s13, %s1652_s9  }
 0x283 PF: > { %s909_s30 = sand.u32 1, %s1631_s18   ;;  %p2013_p7 = scmp.ne.s32.totalorder %s2003_s25, 0 }
 0x284   : > { %p2014_p9 = scmp.ge.s32.totalorder %s1643_s21, 2  ;;  %s910_s7 = scalar_lea.sflag [#allocation4], %s909_s30 }
 0x286   : > { %p1440_p12 = pnand %p2014_p9, %p2013_p7 }
 0x288   : > { %1626 = dma.done.wait (!%p1440_p12), %s910_s7, 256  }
 0x289   : > { %1628 = vsyncadd (!%p1440_p12), %s910_s7, 4294967040  ;;  %p19_p1 = scmp.ge.s32.totalorder %s1799_s29, 4   ;;  %s2015_s18 = smov %s1635_s19 }
 0x28a   : > { %s2016_s19 = smov %s1639_s20  ;;  %s2017_s20 = smov %s1815_s27 }
 0x28b   : > { %s2018_s21 = smov %s1799_s29  ;;  %21 = sbr.rel (!%p19_p1) target bundleno = 6 (0x6), region = 97 }
 0x292   :  { %915 = vsyncpa [#allocation3], 1 }
 0x293   :  { %917 = vsyncpa [#allocation3 + $0x1], 1 }
 0x294   :  { %918 = vsyncpa [#allocation6], 1 }
 0x295   :  { %919 = vsyncpa [#allocation4], 1 }
 0x296   :  { %921 = vsyncpa [#allocation4 + $0x1], 1 }

</bundles_post_ra>
